<compile_context>
chip_gen: v6e
topology: v6e:2x2x1
jax: 0.10.0
libtpu: 0.0.40
codegen_flags: <defaults>
</compile_context>

<pallas_src>
import jax
import jax.numpy as jnp
from jax.experimental import pallas as pl
from jax.experimental.pallas import tpu as pltpu


def _round_up(v, m):
    return (v + m - 1) // m * m


def _cdiv(a, b):
    return -(-a // b)


def _vmem_limit_bytes(need_bytes):
    # 2x headroom for compiler temporaries, capped at 40 MiB so the request
    # also fits comfortably inside v7x's 64 MiB/TC (v5e/v6e have 128 MiB).
    return int(min(40 << 20, max(16 << 20, 2 * need_bytes)))


def _split_tiles(padded_min, target_tile):
    """Pick (tile, padded) with padded % tile == 0, tile ~= target_tile, and
    at least 2 tiles whenever possible (keeps both v7x TensorCores busy)."""
    n_tiles = max(1, _cdiv(padded_min, target_tile))
    if padded_min >= 256:
        n_tiles = max(n_tiles, 2)
    tile = _round_up(_cdiv(padded_min, n_tiles), 128)
    return tile, tile * n_tiles


# ----------------------- Kernel 1: per-node value table ----------------------
def _node_table_kernel(deg_ref, xt_ref, wp_ref, wq_ref, bp_ref, bq_ref,
                       dis_ref, p_ref, q_ref):
    xt = xt_ref[...]                                              # [D, n_tile]
    # 1-wide Linear layers as VPU multiply + sublane reduction (exact f32).
    p = jnp.sum(xt * wp_ref[...], axis=0, keepdims=True) + bp_ref[...]
    q = jnp.sum(xt * wq_ref[...], axis=0, keepdims=True) + bq_ref[...]
    p_ref[...] = jnp.maximum(p, 0.0)                              # [1, n_tile]
    q_ref[...] = jnp.maximum(q, 0.0)
    dis_ref[...] = jax.lax.rsqrt(deg_ref[...])                    # deg^-0.5 (inf if 0)


def node_table(deg2d, xt, wp, wq, bp, bq, n_tile):
    d, n_pad = xt.shape
    lane_spec = pl.BlockSpec((1, n_tile), lambda i: (0, i))
    need = 2 * 4 * (n_tile * (d + 4) + 2 * d + 2)                 # blocks, dbl-buffered
    return pl.pallas_call(
        _node_table_kernel,
        out_shape=(jax.ShapeDtypeStruct((1, n_pad), jnp.float32),) * 3,
        grid_spec=pltpu.PrefetchScalarGridSpec(
            num_scalar_prefetch=0,
            grid=(n_pad // n_tile,),
            in_specs=[
                lane_spec,                                        # deg
                pl.BlockSpec((d, n_tile), lambda i: (0, i)),      # x^T tile
                pl.BlockSpec((d, 1), lambda i: (0, 0)),           # w_p (resident)
                pl.BlockSpec((d, 1), lambda i: (0, 0)),           # w_q (resident)
                pl.BlockSpec((1, 1), lambda i: (0, 0)),           # b_p
                pl.BlockSpec((1, 1), lambda i: (0, 0)),           # b_q
            ],
            out_specs=(lane_spec, lane_spec, lane_spec),
        ),
        compiler_params=pltpu.CompilerParams(
            dimension_semantics=("parallel",),
            vmem_limit_bytes=_vmem_limit_bytes(need),
        ),
    )(deg2d, xt, wp, wq, bp, bq)


# --------------------- Kernel 2: per-edge lane-dense combine ------------------
def _edge_combine_kernel(dis_r_ref, dis_c_ref, p_c_ref, q_r_ref, ea_ref, out_ref):
    edge_attr_t = dis_r_ref[...] * ea_ref[...] * dis_c_ref[...]
    out_ref[...] = edge_attr_t * (p_c_ref[...] + q_r_ref[...])


def edge_combine(dis_r, dis_c, p_c, q_r, ea, e_tile):
    e_pad = ea.shape[1]
    spec = pl.BlockSpec((1, e_tile), lambda i: (0, i))
    need = 2 * 6 * e_tile * 4
    return pl.pallas_call(
        _edge_combine_kernel,
        out_shape=jax.ShapeDtypeStruct((1, e_pad), jnp.float32),
        grid_spec=pltpu.PrefetchScalarGridSpec(
            num_scalar_prefetch=0,
            grid=(e_pad // e_tile,),
            in_specs=[spec] * 5,
            out_specs=spec,
        ),
        compiler_params=pltpu.CompilerParams(
            dimension_semantics=("parallel",),
            vmem_limit_bytes=_vmem_limit_bytes(need),
        ),
    )(dis_r, dis_c, p_c, q_r, ea)


# --------------------------------- Wrapper ------------------------------------
@jax.jit
def edge_attention_forward(x, edge_index, edge_attr, w, b):
    """Pallas EdgeAttention.forward (dropout = identity, eval mode).

    x         : [N, D] float32
    edge_index: [2, E] int
    edge_attr : [E]    float32
    w         : [D, 2] float32  (column 0 = p.weight, column 1 = q.weight)
    b         : [1, 2] float32  (p.bias, q.bias)
    """
    N, D = x.shape
    E = edge_index.shape[1]

    row = edge_index[0].astype(jnp.int32)
    col = edge_index[1].astype(jnp.int32)
    ea = edge_attr.astype(jnp.float32)

    # ---- degree: wrapper-side scatter-add (perf-review structural change) ----
    # TODO(synk): the degree scatter-add and the 4 endpoint gathers below stay
    # in XLA — data-dependent scatter/gather has no efficient dense Pallas TPU
    # equivalent (the previous in-kernel one-hot scheme was O(N*E)).
    deg = jax.ops.segment_sum(jnp.ones((E,), jnp.float32), row, num_segments=N)

    # ---- Pallas kernel 1: node table [dis, p, q] over lane-dense node tiles --
    n_pad0 = _round_up(N, 128)
    n_target = max(128, min(1024, (4 << 20) // (4 * max(D, 1)) // 128 * 128))
    n_tile, n_pad = _split_tiles(n_pad0, n_target)

    deg2d = jnp.pad(deg, (0, n_pad - N), constant_values=1.0).reshape(1, n_pad)
    xt = jnp.pad(x.astype(jnp.float32).T, ((0, 0), (0, n_pad - N)))   # [D, n_pad]
    wf = w.astype(jnp.float32)
    bf = b.astype(jnp.float32).reshape(-1)
    dis2d, p2d, q2d = node_table(deg2d, xt,
                                 wf[:, 0:1], wf[:, 1:2],
                                 bf[0].reshape(1, 1), bf[1].reshape(1, 1),
                                 n_tile)
    dis, p_val, q_val = dis2d[0], p2d[0], q2d[0]                      # [n_pad]

    # ---- endpoint gathers: plain O(E) XLA indexing ---------------------------
    dis_r, dis_c = dis[row], dis[col]
    p_c, q_r = p_val[col], q_val[row]

    # ---- Pallas kernel 2: lane-dense per-edge combine ------------------------
    e_pad0 = _round_up(max(E, 1), 128)
    e_tile, e_pad = _split_tiles(e_pad0, 16384)

    def lane(v):
        return jnp.pad(v, (0, e_pad - E)).reshape(1, e_pad)

    out = edge_combine(lane(dis_r), lane(dis_c), lane(p_c), lane(q_r), lane(ea),
                       e_tile)
    return edge_index, out[0, :E]


# ------------------------------ Pure-JAX reference ----------------------------
def edge_attention_reference(x, edge_index, edge_attr, w, b):
    N = x.shape[0]
    row, col = edge_index[0], edge_index[1]
    deg = jax.ops.segment_sum(jnp.ones_like(edge_attr), row, num_segments=N)
    dis = deg ** -0.5
    s = jnp.maximum(jnp.dot(x, w, precision=jax.lax.Precision.HIGHEST) + b, 0.0)
    p_val, q_val = s[:, 0], s[:, 1]
    edge_attr_t = dis[row] * edge_attr * dis[col]
    return edge_attr_t * (p_val[col] + q_val[row])


if __name__ == "__main__":
    # Small but multi-tile: 2 node tiles (128 each) and 2 edge tiles (256 each).
    N, D, E = 200, 32, 512

    key = jax.random.PRNGKey(0)
    kx, kw, kb, kr, kc, ke = jax.random.split(key, 6)

    x = jax.random.normal(kx, (N, D), dtype=jnp.float32)
    # p.weight [1, D], q.weight [1, D] -> stacked as W [D, 2]; biases -> b [1, 2]
    w = jax.random.normal(kw, (D, 2), dtype=jnp.float32) * 0.1
    b = jax.random.normal(kb, (1, 2), dtype=jnp.float32) * 0.1

    # edges: every node appears at least once as a source (deg > 0, no inf)
    row = jnp.concatenate(
        [jnp.arange(N, dtype=jnp.int32),
         jax.random.randint(kr, (E - N,), 0, N, dtype=jnp.int32)])
    col = jax.random.randint(kc, (E,), 0, N, dtype=jnp.int32)
    edge_index = jnp.stack([row, col], axis=0)                 # [2, E]
    edge_attr = jax.random.uniform(ke, (E,), dtype=jnp.float32) + 0.1

    ei_out, vals = edge_attention_forward(x, edge_index, edge_attr, w, b)
    vals = jax.block_until_ready(vals)

    ref = edge_attention_reference(x, edge_index, edge_attr, w, b)
    assert vals.shape == (E,)
    assert jnp.allclose(vals, ref, atol=1e-5, rtol=1e-5), (vals, ref)

    print("KERNEL_OK")
</pallas_src>

<mosaic_0001>
module attributes {stable_mosaic.version = 11 : i64} {
  func.func private @main(%arg0: i32) attributes {dimension_semantics = [#tpu.dimension_semantics<core_parallel>], iteration_bounds = array<i64: 2>, tpu.core_type = #tpu.core_type<sc_scalar_subcore>, window_params = []} {
    return
  }
}

module attributes {stable_mosaic.version = 11 : i64} {
  func.func private @main(%arg0: i32) attributes {dimension_semantics = [#tpu.dimension_semantics<core_parallel>], iteration_bounds = array<i64: 2>, tpu.core_type = #tpu.core_type<sc_scalar_subcore>, window_params = []} {
    return
  }
}

module attributes {stable_mosaic.version = 11 : i64} {
  func.func @_node_table_kernel(%arg0: i32, %arg1: memref<1x128xf32, #tpu.memory_space<vmem>>, %arg2: memref<32x128xf32, #tpu.memory_space<vmem>>, %arg3: memref<32x1xf32, #tpu.memory_space<vmem>>, %arg4: memref<32x1xf32, #tpu.memory_space<vmem>>, %arg5: memref<1x1xf32, #tpu.memory_space<vmem>>, %arg6: memref<1x1xf32, #tpu.memory_space<vmem>>, %arg7: memref<1x128xf32, #tpu.memory_space<vmem>>, %arg8: memref<1x128xf32, #tpu.memory_space<vmem>>, %arg9: memref<1x128xf32, #tpu.memory_space<vmem>>) attributes {dimension_semantics = [#tpu.dimension_semantics<parallel>], iteration_bounds = array<i64: 2>, scalar_prefetch = 0 : i64, scratch_operands = 0 : i64, tpu.core_type = #tpu.core_type<tc>, window_params = [{transform_indices = @transform_0, window_bounds = array<i64: 1, 128>}, {transform_indices = @transform_1, window_bounds = array<i64: 32, 128>}, {pipeline_mode = #tpu.pipeline_mode<synchronous>, transform_indices = @transform_2, window_bounds = array<i64: 32, 1>}, {pipeline_mode = #tpu.pipeline_mode<synchronous>, transform_indices = @transform_3, window_bounds = array<i64: 32, 1>}, {pipeline_mode = #tpu.pipeline_mode<synchronous>, transform_indices = @transform_4, window_bounds = array<i64: 1, 1>}, {pipeline_mode = #tpu.pipeline_mode<synchronous>, transform_indices = @transform_5, window_bounds = array<i64: 1, 1>}, {transform_indices = @transform_6, window_bounds = array<i64: 1, 128>}, {transform_indices = @transform_7, window_bounds = array<i64: 1, 128>}, {transform_indices = @transform_8, window_bounds = array<i64: 1, 128>}]} {
    %c0 = arith.constant 0 : index
    %c0_0 = arith.constant 0 : index
    %0 = vector.load %arg2[%c0, %c0_0] : memref<32x128xf32, #tpu.memory_space<vmem>>, vector<32x128xf32>
    %c0_1 = arith.constant 0 : index
    %c0_2 = arith.constant 0 : index
    %1 = vector.load %arg3[%c0_1, %c0_2] : memref<32x1xf32, #tpu.memory_space<vmem>>, vector<32x1xf32>
    %2 = vector.broadcast %1 : vector<32x1xf32> to vector<32x128xf32>
    %3 = arith.mulf %0, %2 : vector<32x128xf32>
    %cst = arith.constant dense<0.000000e+00> : vector<128xf32>
    %4 = vector.multi_reduction <add>, %3, %cst [0] : vector<32x128xf32> to vector<128xf32>
    %5 = vector.shape_cast %4 : vector<128xf32> to vector<1x128xf32>
    %c0_3 = arith.constant 0 : index
    %c0_4 = arith.constant 0 : index
    %6 = vector.load %arg5[%c0_3, %c0_4] : memref<1x1xf32, #tpu.memory_space<vmem>>, vector<1x1xf32>
    %7 = vector.broadcast %6 : vector<1x1xf32> to vector<1x128xf32>
    %8 = arith.addf %5, %7 : vector<1x128xf32>
    %c0_5 = arith.constant 0 : index
    %c0_6 = arith.constant 0 : index
    %9 = vector.load %arg4[%c0_5, %c0_6] : memref<32x1xf32, #tpu.memory_space<vmem>>, vector<32x1xf32>
    %10 = vector.broadcast %9 : vector<32x1xf32> to vector<32x128xf32>
    %11 = arith.mulf %0, %10 : vector<32x128xf32>
    %cst_7 = arith.constant dense<0.000000e+00> : vector<128xf32>
    %12 = vector.multi_reduction <add>, %11, %cst_7 [0] : vector<32x128xf32> to vector<128xf32>
    %13 = vector.shape_cast %12 : vector<128xf32> to vector<1x128xf32>
    %c0_8 = arith.constant 0 : index
    %c0_9 = arith.constant 0 : index
    %14 = vector.load %arg6[%c0_8, %c0_9] : memref<1x1xf32, #tpu.memory_space<vmem>>, vector<1x1xf32>
    %15 = vector.broadcast %14 : vector<1x1xf32> to vector<1x128xf32>
    %16 = arith.addf %13, %15 : vector<1x128xf32>
    %cst_10 = arith.constant 0.000000e+00 : f32
    %17 = vector.broadcast %cst_10 : f32 to vector<1x128xf32>
    %18 = arith.maximumf %8, %17 : vector<1x128xf32>
    %c0_11 = arith.constant 0 : index
    %c0_12 = arith.constant 0 : index
    %19 = vector.load %arg8[%c0_11, %c0_12] : memref<1x128xf32, #tpu.memory_space<vmem>>, vector<1x128xf32>
    tpu.vector_store %arg8[%c0_11, %c0_12], %18 {strides = array<i32>} : memref<1x128xf32, #tpu.memory_space<vmem>>, vector<1x128xf32>,
    %cst_13 = arith.constant 0.000000e+00 : f32
    %20 = vector.broadcast %cst_13 : f32 to vector<1x128xf32>
    %21 = arith.maximumf %16, %20 : vector<1x128xf32>
    %c0_14 = arith.constant 0 : index
    %c0_15 = arith.constant 0 : index
    %22 = vector.load %arg9[%c0_14, %c0_15] : memref<1x128xf32, #tpu.memory_space<vmem>>, vector<1x128xf32>
    tpu.vector_store %arg9[%c0_14, %c0_15], %21 {strides = array<i32>} : memref<1x128xf32, #tpu.memory_space<vmem>>, vector<1x128xf32>,
    %c0_16 = arith.constant 0 : index
    %c0_17 = arith.constant 0 : index
    %23 = vector.load %arg1[%c0_16, %c0_17] : memref<1x128xf32, #tpu.memory_space<vmem>>, vector<1x128xf32>
    %24 = math.rsqrt %23 : vector<1x128xf32>
    %c0_18 = arith.constant 0 : index
    %c0_19 = arith.constant 0 : index
    %25 = vector.load %arg7[%c0_18, %c0_19] : memref<1x128xf32, #tpu.memory_space<vmem>>, vector<1x128xf32>
    tpu.vector_store %arg7[%c0_18, %c0_19], %24 {strides = array<i32>} : memref<1x128xf32, #tpu.memory_space<vmem>>, vector<1x128xf32>,
    return
  }
  func.func @transform_0(%arg0: i32) -> (i32, i32) {
    %c0_i32 = arith.constant 0 : i32
    %c0_i32_0 = arith.constant 0 : i32
    return %c0_i32, %arg0 : i32, i32
  }
  func.func @transform_1(%arg0: i32) -> (i32, i32) {
    %c0_i32 = arith.constant 0 : i32
    %c0_i32_0 = arith.constant 0 : i32
    return %c0_i32, %arg0 : i32, i32
  }
  func.func @transform_2(%arg0: i32) -> (i32, i32) {
    %c0_i32 = arith.constant 0 : i32
    %c0_i32_0 = arith.constant 0 : i32
    %c0_i32_1 = arith.constant 0 : i32
    return %c0_i32, %c0_i32_0 : i32, i32
  }
  func.func @transform_3(%arg0: i32) -> (i32, i32) {
    %c0_i32 = arith.constant 0 : i32
    %c0_i32_0 = arith.constant 0 : i32
    %c0_i32_1 = arith.constant 0 : i32
    return %c0_i32, %c0_i32_0 : i32, i32
  }
  func.func @transform_4(%arg0: i32) -> (i32, i32) {
    %c0_i32 = arith.constant 0 : i32
    %c0_i32_0 = arith.constant 0 : i32
    %c0_i32_1 = arith.constant 0 : i32
    return %c0_i32, %c0_i32_0 : i32, i32
  }
  func.func @transform_5(%arg0: i32) -> (i32, i32) {
    %c0_i32 = arith.constant 0 : i32
    %c0_i32_0 = arith.constant 0 : i32
    %c0_i32_1 = arith.constant 0 : i32
    return %c0_i32, %c0_i32_0 : i32, i32
  }
  func.func @transform_6(%arg0: i32) -> (i32, i32) {
    %c0_i32 = arith.constant 0 : i32
    %c0_i32_0 = arith.constant 0 : i32
    return %c0_i32, %arg0 : i32, i32
  }
  func.func @transform_7(%arg0: i32) -> (i32, i32) {
    %c0_i32 = arith.constant 0 : i32
    %c0_i32_0 = arith.constant 0 : i32
    return %c0_i32, %arg0 : i32, i32
  }
  func.func @transform_8(%arg0: i32) -> (i32, i32) {
    %c0_i32 = arith.constant 0 : i32
    %c0_i32_0 = arith.constant 0 : i32
    return %c0_i32, %arg0 : i32, i32
  }
}

module attributes {stable_mosaic.version = 11 : i64} {
  func.func @_edge_combine_kernel(%arg0: i32, %arg1: memref<1x256xf32, #tpu.memory_space<vmem>>, %arg2: memref<1x256xf32, #tpu.memory_space<vmem>>, %arg3: memref<1x256xf32, #tpu.memory_space<vmem>>, %arg4: memref<1x256xf32, #tpu.memory_space<vmem>>, %arg5: memref<1x256xf32, #tpu.memory_space<vmem>>, %arg6: memref<1x256xf32, #tpu.memory_space<vmem>>) attributes {dimension_semantics = [#tpu.dimension_semantics<parallel>], iteration_bounds = array<i64: 2>, scalar_prefetch = 0 : i64, scratch_operands = 0 : i64, tpu.core_type = #tpu.core_type<tc>, window_params = [{transform_indices = @transform_0, window_bounds = array<i64: 1, 256>}, {transform_indices = @transform_1, window_bounds = array<i64: 1, 256>}, {transform_indices = @transform_2, window_bounds = array<i64: 1, 256>}, {transform_indices = @transform_3, window_bounds = array<i64: 1, 256>}, {transform_indices = @transform_4, window_bounds = array<i64: 1, 256>}, {transform_indices = @transform_5, window_bounds = array<i64: 1, 256>}]} {
    %c0 = arith.constant 0 : index
    %c0_0 = arith.constant 0 : index
    %0 = vector.load %arg1[%c0, %c0_0] : memref<1x256xf32, #tpu.memory_space<vmem>>, vector<1x256xf32>
    %c0_1 = arith.constant 0 : index
    %c0_2 = arith.constant 0 : index
    %1 = vector.load %arg5[%c0_1, %c0_2] : memref<1x256xf32, #tpu.memory_space<vmem>>, vector<1x256xf32>
    %2 = arith.mulf %0, %1 : vector<1x256xf32>
    %c0_3 = arith.constant 0 : index
    %c0_4 = arith.constant 0 : index
    %3 = vector.load %arg2[%c0_3, %c0_4] : memref<1x256xf32, #tpu.memory_space<vmem>>, vector<1x256xf32>
    %4 = arith.mulf %2, %3 : vector<1x256xf32>
    %c0_5 = arith.constant 0 : index
    %c0_6 = arith.constant 0 : index
    %5 = vector.load %arg3[%c0_5, %c0_6] : memref<1x256xf32, #tpu.memory_space<vmem>>, vector<1x256xf32>
    %c0_7 = arith.constant 0 : index
    %c0_8 = arith.constant 0 : index
    %6 = vector.load %arg4[%c0_7, %c0_8] : memref<1x256xf32, #tpu.memory_space<vmem>>, vector<1x256xf32>
    %7 = arith.addf %5, %6 : vector<1x256xf32>
    %8 = arith.mulf %4, %7 : vector<1x256xf32>
    %c0_9 = arith.constant 0 : index
    %c0_10 = arith.constant 0 : index
    %9 = vector.load %arg6[%c0_9, %c0_10] : memref<1x256xf32, #tpu.memory_space<vmem>>, vector<1x256xf32>
    tpu.vector_store %arg6[%c0_9, %c0_10], %8 {strides = array<i32>} : memref<1x256xf32, #tpu.memory_space<vmem>>, vector<1x256xf32>,
    return
  }
  func.func @transform_0(%arg0: i32) -> (i32, i32) {
    %c0_i32 = arith.constant 0 : i32
    %c0_i32_0 = arith.constant 0 : i32
    return %c0_i32, %arg0 : i32, i32
  }
  func.func @transform_1(%arg0: i32) -> (i32, i32) {
    %c0_i32 = arith.constant 0 : i32
    %c0_i32_0 = arith.constant 0 : i32
    return %c0_i32, %arg0 : i32, i32
  }
  func.func @transform_2(%arg0: i32) -> (i32, i32) {
    %c0_i32 = arith.constant 0 : i32
    %c0_i32_0 = arith.constant 0 : i32
    return %c0_i32, %arg0 : i32, i32
  }
  func.func @transform_3(%arg0: i32) -> (i32, i32) {
    %c0_i32 = arith.constant 0 : i32
    %c0_i32_0 = arith.constant 0 : i32
    return %c0_i32, %arg0 : i32, i32
  }
  func.func @transform_4(%arg0: i32) -> (i32, i32) {
    %c0_i32 = arith.constant 0 : i32
    %c0_i32_0 = arith.constant 0 : i32
    return %c0_i32, %arg0 : i32, i32
  }
  func.func @transform_5(%arg0: i32) -> (i32, i32) {
    %c0_i32 = arith.constant 0 : i32
    %c0_i32_0 = arith.constant 0 : i32
    return %c0_i32, %arg0 : i32, i32
  }
}

</mosaic_0001>

<bundles_post_ra>
// kernel: edge_attention_forward.3
= control target key start
LH: loop header
LB: loop body
LE: loop exit
PB: predicated region body
PF: predicated region fallthrough
CT: control target
= control target key end

     0   :  { %10 = vsyncpa [#allocation3], 0  ;;  %s666_s0 = inlined_call_operand.vmem [shape: f32[1,512], index: 0, kind: input, shape index: {}]   ;;  %s667_s1 = inlined_call_operand.vmem [shape: f32[1,512], index: 1, kind: input, shape index: {}]   ;;  %s668_s2 = inlined_call_operand.vmem [shape: f32[1,512], index: 2, kind: input, shape index: {}]   ;;  %s669_s3 = inlined_call_operand.vmem [shape: f32[1,512], index: 3, kind: input, shape index: {}]   ;;  %s670_s4 = inlined_call_operand.vmem [shape: f32[1,512], index: 4, kind: input, shape index: {}]   ;;  %s671_s5 = inlined_call_operand.hbm [shape: f32[1,512], index: 5, kind: output, shape index: {}]  }
   0x1   :  { %12 = vsyncpa [#allocation3 + $0x1], 0  ;;  %s568_s18 = smov 0   ;;  %s570_s19 = smov 0  }
   0x2   :  { %s572_s20 = smov 0   ;;  %s574_s21 = smov 0  }
   0x3 LB: > { %673 = sst [smem:[#allocation5_spill]] %s531_s20  ;;  %s589_s22 = sadd.s32 4294967295, %s535_s21   ;;  %s535_s21 = sphi %s574_s21, %s681_s21   ;;  %s531_s20 = sphi %s572_s20, %s678_s20   ;;  %s527_s19 = sphi %s570_s19, %s680_s19   ;;  %s523_s18 = sphi %s568_s18, %s679_s18  }
   0x4   : > { %s420_s23 = sadd.s32 4294967294, %s535_s21   ;;  %s593_s24 = sadd.s32 1, %s535_s21  }
   0x5   : > { %s155_s25 = sadd.s32 1, %s531_s20  ;;  %s152_s26 = ssub.s32 %s535_s21, %s593_s24 }
   0x6   : > { %p165_p0 = scmp.ne.s32.totalorder %s531_s20, %s527_s19  ;;  %p153_p1 = scmp.eq.s32.totalorder %s152_s26, 0 }
   0x7   : > { %p166_p2 = scmp.eq.s32.totalorder %s589_s22, 1  ;;  %p171_p3 = scmp.ne.s32.totalorder %s527_s19, %s523_s18 }
   0x8   : > { %p172_p4 = scmp.eq.s32.totalorder %s420_s23, 1  ;;  %p423_p7 = scmp.ge.s32.totalorder %s535_s21, 1 }
   0x9   : > { %s604_s27 = scalar_select %p153_p1, %s531_s20, %s155_s25  }
   0xa   : > { %p606_p5 = por %p166_p2, %p165_p0  ;;  %p610_p6 = por %p172_p4, %p171_p3 }
   0xb   : > { %674 = sst [smem:[#allocation6_spill]] %s604_s27  ;;  %p230_p8 = scmp.lt.s32.totalorder %s535_s21, 3 }
   0xd   : > { %p231_p9 = pnand %p423_p7, %p230_p8 }
   0xe   : > { %s425_s30 = sshll.u32 (!%p231_p9), %s589_s22, 1  ;;  %s270_s6 = sand.u32 (!%p231_p9), 1, %s527_s19  }
   0xf   : > { %234 = sbr.rel (%p231_p9) target bundleno = 46 (0x2e), region = 40  ;;  %p274_p10 = scmp.lt.s32.totalorder (!%p231_p9), %s425_s30, 3 }
  0x10   : > { %s424_s7 = sshll.u32 (!%p231_p9), %s270_s6, 1  ;;  %s435_s11 = sshll.u32 (!%p231_p9), %s589_s22, 5 }
  0x11   : > { %s272_s8 = scalar_lea.vmem (!%p231_p9), [#allocation2], %s424_s7  ;;  %s326_s27 = scalar_lea.hbm (!%p231_p9), %s671_s5, %s435_s11 }
  0x12   : > { %s328_s9 = sshll.u32 (!%p231_p9), %s272_s8, 4  ;;  %s329_s9 = int_to_ptr.vmem [resolvable:$true] %s328_s9 }
  0x13   : > { %s475_s14 = scalar_lea.vmem (!%p231_p9), %s329_s9, 32 }
  0x14   : > { %s683_s30 = smov (!%p274_p10, %s425_s30), 3  ;;  %v308_v5 = vlaneseq  ;;  %p476_p11 = scmp.ne.s32.totalorder %s329_s9, %s475_s14 }
  0x15   : > { %s276_s10 = scalar_lea.vmem %s666_s0, %s683_s30  ;;  %s281_s13 = scalar_lea.vmem %s667_s1, %s683_s30 }
  0x16   : > { %s286_s16 = scalar_lea.vmem %s668_s2, %s683_s30  ;;  %s291_s25 = scalar_lea.vmem %s669_s3, %s683_s30  ;;  %v299_v0 = vld [vmem:[%s276_s10] sm:$0x3]  ;;  %vm310_vm0 = vcmp.lt.s32.totalorder %v308_v5, 256 }
  0x17   : > { %s296_s20 = scalar_lea.vmem %s670_s4, %s683_s30  ;;  %v304_v1 = vld [vmem:[%s286_s16] sm:$0x3]  ;;  %s314_s30 = scalar_lea.sflag [#allocation3], %s270_s6 }
  0x18   : > { %v305_v2 = vld [vmem:[%s291_s25] sm:$0x3]  ;;  %p477_p12 = pnand %p476_p11, %p606_p5 }
  0x19   : > { %v300_v3 = vld [vmem:[%s296_s20] sm:$0x3]  ;;  %v306_v7 = vadd.f32 %v305_v2, %v304_v1  ;;  %s537_s20 = smov [#allocation2]  }
  0x1a   : > { %v302_v4 = vld [vmem:[%s281_s13] sm:$0x3]  ;;  %v301_v6 = vmul.f32 %v300_v3, %v299_v0  ;;  %p478_p13 = pneg %p477_p12  ;;  %s479_s13 = sshll.u32 %s537_s20, 4  ;;  %s480_s13 = int_to_ptr.vmem [resolvable:$false] %s479_s13 }
  0x1b   : > { %s481_s7 = scalar_lea.vmem %s480_s13, 64  ;;  %p482_p0 = scmp.lt.s32.totalorder %s329_s9, %s480_s13 }
  0x1c   : > { %v303_v8 = vmul.f32 %v302_v4, %v301_v6  ;;  %p483_p1 = scmp.lt.s32.totalorder %s481_s7, %s475_s14 }
  0x1e   : > { %v307_v9 = vmul.f32 %v306_v7, %v303_v8  ;;  %p484_p2 = por %p483_p1, %p482_p0 }
  0x20   : > { %312 = vst.msk [vmem:[%s272_s8] sm:$0x3] %vm310_vm0, %v307_v9  ;;  %p485_p3 = pnand %p484_p2, %p478_p13 }
  0x22   : > { %488 = shalt.err (!%p485_p3)
}
  0x23   : > { %s489_s22 = scalar_lea.hbm %s326_s27, 32  ;;  %s493_s16 = scalar_lea.hbm %s671_s5, 64 }
  0x24   : > { %p490_p4 = scmp.ne.s32.totalorder %s326_s27, %s489_s22  ;;  %p494_p9 = scmp.lt.s32.totalorder %s326_s27, %s671_s5 }
  0x25   : > { %p495_p10 = scmp.lt.s32.totalorder %s493_s16, %s489_s22 }
  0x26   : > { %p491_p7 = pnand %p490_p4, %p606_p5 }
  0x27   : > { %p496_p11 = por %p495_p10, %p494_p9 }
  0x28   : > { %p492_p8 = pneg %p491_p7 }
  0x2a   : > { %p497_p12 = pnand %p496_p11, %p492_p8 }
  0x2c   : > { %500 = shalt.err (!%p497_p12)
}
  0x2d   : > { %436 = dma.vmem_to_hbm [thread:$0]  (%p606_p5), %s329_s9, 32, %s326_s27, %s314_s30  }
  0x2e PF: > { %p442_p13 = scmp.ge.s32.totalorder %s535_s21, 2  ;;  %s340_s25 = sand.u32 1, %s523_s18  }
  0x2f   : > { %s341_s26 = scalar_lea.sflag [#allocation3], %s340_s25 }
  0x30   : > { %p439_p0 = pnand %p442_p13, %p610_p6 }
  0x32   : > { %p440_p1 = pneg %p439_p0 }
  0x34   : > { %518 = dma.done.wait (%p440_p1), %s341_s26, 32  }
  0x35   : > { %520 = vsyncadd (%p440_p1), %s341_s26, 4294967264  ;;  %s677_s8 = sld [smem:[#allocation5_spill]]  ;;  %p15_p2 = scmp.ge.s32.totalorder %s593_s24, 4  }
  0x36   : > { %s678_s20 = sld [smem:[#allocation6_spill]]  ;;  %s679_s18 = smov %s527_s19 }
  0x37   : > { %s681_s21 = smov %s593_s24  ;;  %17 = sbr.rel (!%p15_p2) target bundleno = 3 (0x3), region = 87 }
  0x3b   : > { %s680_s19 = smov %s677_s8 }
  0x3c   :  { %346 = vsyncpa [#allocation3], 1 }
  0x3d   :  { %348 = vsyncpa [#allocation3 + $0x1], 1 }

// kernel: edge_attention_forward.2
= control target key start
LH: loop header
LB: loop body
LE: loop exit
PB: predicated region body
PF: predicated region fallthrough
CT: control target
= control target key end

     0   :  { %s811_s0 = inlined_call_operand.vmem [shape: f32[1,256], index: 0, kind: input, shape index: {}]   ;;  %s812_s1 = inlined_call_operand.vmem [shape: f32[32,256], index: 1, kind: input, shape index: {}]   ;;  %s813_s2 = inlined_call_operand.vmem [shape: f32[32,1], index: 2, kind: input, shape index: {}]   ;;  %s814_s3 = inlined_call_operand.vmem [shape: f32[32,1], index: 3, kind: input, shape index: {}]   ;;  %s815_s4 = inlined_call_operand.<no memory space> [shape: f32[1,1], index: 4, kind: input, shape index: {}]   ;;  %s816_s6 = inlined_call_operand.vmem [shape: f32[1,256], index: 6, kind: output, shape index: {0}]   ;;  %s817_s7 = inlined_call_operand.vmem [shape: f32[1,256], index: 7, kind: output, shape index: {1}]   ;;  %s818_s8 = inlined_call_operand.vmem [shape: f32[1,256], index: 8, kind: output, shape index: {2}]   ;;  %s819_s5 = inlined_call_operand.<no memory space> [shape: f32[1,1], index: 5, kind: input, shape index: {}]  }
   0x1   :  { %v14_v0 = vstv %s815_s4  ;;  %v16_v1 = vstv %s819_s5 }
   0x2   :  { %15 = vst [vmem:[#allocation2] sm:$0x1] %v14_v0  ;;  %17 = vst [vmem:[#allocation3] sm:$0x1] %v16_v1 }
   0x3   :  { %s718_s9 = smov 0   ;;  %s720_s10 = smov 0  }
   0x4   :  { %s722_s11 = smov 0  }
   0x5 LB: > { %s603_s4 = sadd.s32 4294967295, %s664_s11   ;;  %s735_s5 = sadd.s32 1, %s664_s11   ;;  %s664_s11 = sphi %s722_s11, %s822_s11   ;;  %s660_s10 = sphi %s720_s10, %s821_s10   ;;  %s656_s9 = sphi %s718_s9, %s820_s9  }
   0x6   : > { %s53_s12 = ssub.s32 %s664_s11, %s735_s5  ;;  %s56_s13 = sadd.s32 1, %s660_s10 }
   0x7   : > { %p54_p0 = scmp.eq.s32.totalorder %s53_s12, 0  ;;  %p63_p1 = scmp.ne.s32.totalorder %s660_s10, %s656_s9 }
   0x8   : > { %p64_p2 = scmp.eq.s32.totalorder %s664_s11, 0  ;;  %p606_p4 = scmp.ge.s32.totalorder %s664_s11, 2 }
   0x9   : > { %s744_s14 = scalar_select %p54_p0, %s660_s10, %s56_s13  }
   0xa   : > { %p65_p3 = por %p64_p2, %p63_p1  ;;  %263 = sbr.rel (%p606_p4) target bundleno = 21 (0x15), region = 32 }
   0xf   : > { %272 = sbr.rel (!%p65_p3) target bundleno = 21 (0x15), region = 40  ;;  %s274_s15 = sand.u32 (%p65_p3), 1, %s660_s10  }
  0x10   : > { %s608_s16 = sshll.u32 (%p65_p3), %s664_s11, 3  ;;  %s607_s17 = sshll.u32 (%p65_p3), %s274_s15, 5 }
  0x11   : > { %s278_s20 = scalar_lea.vmem (%p65_p3), %s812_s1, %s608_s16  ;;  %s276_s21 = scalar_lea.vmem (%p65_p3), [#allocation4], %s607_s17 }
  0x12   : > { %v313_v2 = vld [vmem:[%s278_s20] sm:$0xff] (%p65_p3)  ;;  %v315_v3 = vld [vmem:[%s278_s20 + $0x10] sm:$0xff] (%p65_p3) }
  0x13   : > { %v317_v4 = vld [vmem:[%s278_s20 + $0x20] sm:$0xff] (%p65_p3)  ;;  %314 = vst [vmem:[%s276_s21] sm:$0xff] (%p65_p3), %v313_v2  ;;  %316 = vst [vmem:[%s276_s21 + $0x8] sm:$0xff] (%p65_p3), %v315_v3  ;;  %v319_v5 = vld [vmem:[%s278_s20 + $0x30] sm:$0xff] (%p65_p3) }
  0x14   : > { %318 = vst [vmem:[%s276_s21 + $0x10] sm:$0xff] %v317_v4  ;;  %320 = vst [vmem:[%s276_s21 + $0x18] sm:$0xff] %v319_v5 }
  0x15 PF: > { %p609_p5 = scmp.ge.s32.totalorder %s664_s11, 1  ;;  %p325_p6 = scmp.lt.s32.totalorder %s664_s11, 3 }
  0x17   : > { %p326_p7 = pnand %p609_p5, %p325_p6 }
  0x18   : > { %p372_p8 = scmp.lt.s32.totalorder (!%p326_p7), %s603_s4, 1  ;;  %s332_s25 = sand.u32 (!%p326_p7), 1, %s656_s9  }
  0x19   : > { %329 = sbr.rel (%p326_p7) target bundleno = 189 (0xbd), region = 78  ;;  %s610_s26 = sshll.u32 (!%p326_p7), %s332_s25, 5 }
  0x1a   : > { %s334_s27 = scalar_lea.vmem (!%p326_p7), [#allocation4], %s610_s26 }
  0x1e   : > { %v436_v6 = vld [vmem:[%s814_s3] sm:$0xff]  ;;  %v666_v8 = vmov 0   ;;  %v437_v9 = vld [vmem:[%s814_s3 + $0x8] sm:$0xff]  ;;  %v438_v11 = vld [vmem:[%s814_s3 + $0x10] sm:$0xff]  ;;  %s824_s4 = smov (!%p372_p8, %s603_s4), 1  ;;  %v431_v45 = vlaneseq }
  0x1f   : > { %v388_v7 = vld [vmem:[%s813_s2] sm:$0xff]  ;;  %639 = vset.pattern.permute.xlu1 %v666_v8  ;;  %638 = vset.pattern.permute.xlu0 %v666_v8  ;;  %v389_v10 = vld [vmem:[%s813_s2 + $0x8] sm:$0xff]  ;;  %v390_v12 = vld [vmem:[%s813_s2 + $0x10] sm:$0xff]  ;;  %s374_s22 = scalar_lea.vmem %s811_s0, %s824_s4  ;;  %s377_s11 = scalar_lea.vmem %s816_s6, %s824_s4 }
  0x20   : > { %442 = vperm.xlu1 %639, %v436_v6   ;;  %394 = vperm.xlu0 %638, %v388_v7   ;;  %v439_v13 = vld [vmem:[%s814_s3 + $0x18] sm:$0xff]  ;;  %v473_v15 = vld [vmem:[#allocation3] sm:$0x1]  ;;  %v425_v16 = vld [vmem:[#allocation2] sm:$0x1]  ;;  %v432_v50 = vshrl.u32 %v431_v45, 7  ;;  %s383_s29 = scalar_lea.vmem %s818_s8, %s824_s4  ;;  %s380_s13 = scalar_lea.vmem %s817_s7, %s824_s4 }
  0x21   : > { %v391_v14 = vld [vmem:[%s813_s2 + $0x18] sm:$0xff]  ;;  %v488_v17 = vld [vmem:[%s374_s22] sm:$0x1]  ;;  %v385_v22 = vld [vmem:[%s334_s27 + $0x8] sm:$0xff] }
  0x22   : > { %640 = vrsqrt.f32 %v488_v17  ;;  %v384_v24 = vld [vmem:[%s334_s27] sm:$0xff]  ;;  %v386_v25 = vld [vmem:[%s334_s27 + $0x10] sm:$0xff]  ;;  %v387_v34 = vld [vmem:[%s334_s27 + $0x18] sm:$0xff]  ;;  %v433_v53 = vsub.s32 0, %v432_v50 }
  0x24   : > { %447 = vperm.xlu1 %639, %v437_v9   ;;  %399 = vperm.xlu0 %638, %v389_v10  }
  0x28   : > { %452 = vperm.xlu1 %639, %v438_v11   ;;  %404 = vperm.xlu0 %638, %v390_v12  }
  0x2c   : > { %457 = vperm.xlu1 %639, %v439_v13   ;;  %409 = vperm.xlu0 %638, %v391_v14  }
  0x2f   : > { %v641_v18 = vpop.eup %640 }
  0x30   : > { %476 = vperm.xlu1 %639, %v473_v15   ;;  %428 = vperm.xlu0 %638, %v425_v16   ;;  %490 = vst [vmem:[%s377_s11] sm:$0x1] %v641_v18 }
  0x9b   : > { %v443_v19 = vpop.permute.xlu1 %442  ;;  %v395_v20 = vpop.permute.xlu0 %394 }
  0x9c   : > { %v460_v30 = vmul.f32 %v443_v19, %v384_v24  ;;  %v412_v31 = vmul.f32 %v395_v20, %v384_v24 }
  0x9f   : > { %v448_v21 = vpop.permute.xlu1 %447  ;;  %v400_v23 = vpop.permute.xlu0 %399 }
  0xa0   : > { %v461_v26 = vmul.f32 %v448_v21, %v385_v22  ;;  %v413_v27 = vmul.f32 %v400_v23, %v385_v22 }
  0xa2   : > { %v464_v35 = vadd.f32 %v461_v26, %v460_v30  ;;  %v416_v36 = vadd.f32 %v413_v27, %v412_v31 }
  0xa3   : > { %v453_v28 = vpop.permute.xlu1 %452  ;;  %v405_v29 = vpop.permute.xlu0 %404 }
  0xa4   : > { %v462_v32 = vmul.f32 %v453_v28, %v386_v25  ;;  %v414_v33 = vmul.f32 %v405_v29, %v386_v25 }
  0xa6   : > { %v465_v39 = vadd.f32 %v464_v35, %v462_v32  ;;  %v417_v40 = vadd.f32 %v416_v36, %v414_v33 }
  0xa7   : > { %v458_v37 = vpop.permute.xlu1 %457  ;;  %v410_v38 = vpop.permute.xlu0 %409 }
  0xa8   : > { %v463_v41 = vmul.f32 %v458_v37, %v387_v34  ;;  %v415_v42 = vmul.f32 %v410_v38, %v387_v34 }
  0xaa   : > { %v466_v43 = vadd.f32 %v465_v39, %v463_v41  ;;  %v418_v44 = vadd.f32 %v417_v40, %v415_v42 }
  0xab   : > { %v477_v56 = vpop.permute.xlu1 %476  ;;  %v429_v57 = vpop.permute.xlu0 %428 }
  0xac   : > { %v467_v46 = vrot.slane %v466_v43, 4  ;;  %v419_v47 = vrot.slane %v418_v44, 4  ;;  %v482_v61 = vrot.slane %v477_v56, %v433_v53  ;;  %v434_v63 = vrot.slane %v429_v57, %v433_v53 }
  0xae   : > { %v468_v48 = vadd.f32 %v467_v46, %v466_v43  ;;  %v420_v49 = vadd.f32 %v419_v47, %v418_v44 }
  0xb0   : > { %v469_v51 = vrot.slane %v468_v48, 2  ;;  %v421_v52 = vrot.slane %v420_v49, 2 }
  0xb2   : > { %v470_v54 = vadd.f32 %v469_v51, %v468_v48  ;;  %v422_v55 = vadd.f32 %v421_v52, %v420_v49 }
  0xb4   : > { %v471_v58 = vrot.slane %v470_v54, 1  ;;  %v423_v59 = vrot.slane %v422_v55, 1 }
  0xb6   : > { %v472_v60 = vadd.f32 %v471_v58, %v470_v54  ;;  %v424_v62 = vadd.f32 %v423_v59, %v422_v55 }
  0xb8   : > { %v483_v0 = vadd.f32 %v482_v61, %v472_v60  ;;  %v435_v1 = vadd.f32 %v434_v63, %v424_v62 }
  0xba   : > { %v486_v2 = vmax.f32 %v483_v0, 0.0  ;;  %v484_v3 = vmax.f32 %v435_v1, 0.0 }
  0xbc   : > { %487 = vst [vmem:[%s383_s29] sm:$0x1] %v486_v2  ;;  %485 = vst [vmem:[%s380_s13] sm:$0x1] %v484_v3 }
  0xbd PF: > { %p20_p9 = scmp.ge.s32.totalorder %s735_s5, 4   ;;  %s820_s9 = smov %s660_s10 }
  0xbe   : > { %s821_s10 = smov %s744_s14  ;;  %s822_s11 = smov %s735_s5 }
  0xbf   :  { %22 = sbr.rel (!%p20_p9) target bundleno = 5 (0x5), region = 144 }

</bundles_post_ra>
